<compile_context>
chip_gen: v5e
topology: v5e:2x2
jax: 0.10.0
libtpu: 0.0.40
codegen_flags: <defaults>
</compile_context>

<pallas_src>
import functools

import jax
import jax.numpy as jnp
from jax.experimental import pallas as pl
from jax.experimental.pallas import tpu as pltpu


# ---------------------------------------------------------------------------
# Pallas kernels
# ---------------------------------------------------------------------------
def _conv1_rows_kernel(r0_ref, r1_ref, w_ref, y_ref, stats_ref):
    """One output row of conv_1, expressed as a 2x2/s1 conv on the s2d input.

    r0_ref, r1_ref: (1, 1, Wo+1, 4*Cin)  space-to-depth input rows ho, ho+1
    w_ref:          (2, 2, 4*Cin, Cout)  rearranged conv_1 weight (resident)
    y_ref:          (1, 1, Wo, Cout)     raw conv_1 row (no bias)
    stats_ref:      (1, 1, 2, Cout)      per-row [sum, sum of squares] (f32)
    """
    wo = y_ref.shape[2]
    cout = y_ref.shape[3]
    acc = jnp.zeros((wo, cout), jnp.float32)
    rows = (r0_ref, r1_ref)
    for a in range(2):
        for b in range(2):
            tap = rows[a][0, 0, pl.ds(b, wo), :]          # (Wo, 4*Cin)
            acc += jnp.dot(tap, w_ref[a, b],
                           preferred_element_type=jnp.float32)
    y_ref[0, 0] = acc.astype(y_ref.dtype)
    # Single-pass BN partials (reduced to mean / E[y^2] in the wrapper).
    stats_ref[0, 0, 0:1, :] = jnp.sum(acc, axis=0, keepdims=True)
    stats_ref[0, 0, 1:2, :] = jnp.sum(acc * acc, axis=0, keepdims=True)


def _bn_relu_conv2_kernel(r0_ref, r1_ref, r2_ref, scale_ref, shift_ref,
                          w_ref, b_ref, o_ref):
    """One output row of: ReLU(affine(y1)) -> conv_2 (3x3/p1) -> +b2 -> ReLU.

    r{k}_ref:  (1, 1, Wo+2, C)  zero-padded raw-conv_1 rows ho+k, k in 0..2
    scale_ref: (1, C) f32  gamma*rsqrt(var+eps)   (or ones if use_bn=False)
    shift_ref: (1, C) f32  beta - mean*scale      (or the conv_1 bias)
    w_ref:     (3, 3, C, Cout)   rearranged conv_2 weight (resident)
    b_ref:     (1, Cout) f32
    o_ref:     (1, 1, Wo, Cout)
    """
    ho = pl.program_id(1)
    n_rows = pl.num_programs(1)                        # Ho
    wp = r0_ref.shape[2]                               # Wo + 2
    wo = o_ref.shape[2]
    cout = o_ref.shape[3]

    scale = scale_ref[...]                             # (1, C) f32
    shift = shift_ref[...]
    # conv_2's zero padding must stay exactly zero *after* the affine+ReLU,
    # so mask the padded columns / rows explicitly.
    col = jax.lax.broadcasted_iota(jnp.int32, (wp, 1), 0)
    col_mask = jnp.logical_and(col >= 1, col <= wo).astype(jnp.float32)

    acc = jnp.zeros((wo, cout), jnp.float32) + b_ref[...]
    rows = (r0_ref, r1_ref, r2_ref)
    for kh in range(3):
        row_idx = ho + kh                              # index in padded y1
        row_ok = jnp.logical_and(row_idx >= 1, row_idx <= n_rows)
        rv = jnp.where(row_ok, 1.0, 0.0)
        raw = rows[kh][0, 0].astype(jnp.float32)       # (Wo+2, C), f32 math
        act = jnp.maximum(raw * scale + shift, 0.0) * col_mask * rv
        act = act.astype(w_ref.dtype)                  # matmul staging dtype
        for kw in range(3):
            tap = act[kw:kw + wo, :]                   # (Wo, C)
            acc += jnp.dot(tap, w_ref[kh, kw],
                           preferred_element_type=jnp.float32)
    o_ref[0, 0] = jnp.maximum(acc, 0.0).astype(o_ref.dtype)


# ---------------------------------------------------------------------------
# Layout plumbing (pure data rearrangement, O(1) passes over the input)
# ---------------------------------------------------------------------------
def _space_to_depth_2x2(xp):
    """(N, 2*Hb, 2*Wb, C) -> (N, Hb, Wb, 4*C), channel order (r, s, c)."""
    n, hp, wp, c = xp.shape
    x = xp.reshape(n, hp // 2, 2, wp // 2, 2, c)
    x = x.transpose(0, 1, 3, 2, 4, 5)
    return x.reshape(n, hp // 2, wp // 2, 4 * c)


def _rearrange_w1(w1):
    """(Cout, Cin, 4, 4) -> (2, 2, 4*Cin, Cout), matching the s2d channels."""
    cout, cin = w1.shape[0], w1.shape[1]
    w = w1.reshape(cout, cin, 2, 2, 2, 2)              # (co, ci, a, r, b, s)
    w = w.transpose(2, 4, 3, 5, 1, 0)                  # (a, b, r, s, ci, co)
    return w.reshape(2, 2, 4 * cin, cout)


def _rearrange_w2(w2):
    """(Cout, C, 3, 3) -> (3, 3, C, Cout)."""
    return jnp.transpose(w2, (2, 3, 1, 0))


# ---------------------------------------------------------------------------
# Forward pass
# ---------------------------------------------------------------------------
@functools.partial(jax.jit, static_argnames=("use_bn", "matmul_dtype"))
def downsample_x2_forward(x_nchw, params, use_bn=True,
                          matmul_dtype=jnp.float32):
    w1, b1 = params["w1"], params["b1"]
    gamma, beta = params["gamma"], params["beta"]
    w2, b2 = params["w2"], params["b2"]

    n, cin, h, w = x_nchw.shape
    cout = w1.shape[0]
    if h % 2 or w % 2:
        raise ValueError("DownSampleX2 Pallas kernel expects even H and W")
    ho, wo = h // 2, w // 2
    k4 = 4 * cin
    f32 = jnp.float32
    vmem_limit = 32 * 1024 * 1024   # well above per-step needs on all gens

    # NCHW -> NHWC, pad by 1, 2x2 space-to-depth (conv_1 becomes 2x2/s1).
    x = jnp.transpose(x_nchw, (0, 2, 3, 1)).astype(f32)
    xp = jnp.pad(x, ((0, 0), (1, 1), (1, 1), (0, 0)))          # (N,H+2,W+2,Cin)
    xs = _space_to_depth_2x2(xp).astype(matmul_dtype)          # (N,Ho+1,Wo+1,4Cin)
    w1f = _rearrange_w1(w1).astype(matmul_dtype)               # (2,2,4Cin,Cout)

    # ---- kernel 1: conv_1 rows + per-row BN partial statistics ------------
    itm = jnp.dtype(matmul_dtype).itemsize
    conv1_cost = pl.CostEstimate(
        flops=2 * n * ho * wo * (16 * cin) * cout,
        transcendentals=0,
        bytes_accessed=int(2 * xs.size * itm
                           + n * ho * wo * cout * itm
                           + n * ho * 2 * cout * 4),
    )
    y1_raw, stats = pl.pallas_call(
        _conv1_rows_kernel,
        grid=(n, ho),
        in_specs=[
            # output row j needs s2d rows j and j+1 (1-row halo via offset map)
            pl.BlockSpec((1, 1, wo + 1, k4), lambda i, j: (i, j, 0, 0)),
            pl.BlockSpec((1, 1, wo + 1, k4), lambda i, j: (i, j + 1, 0, 0)),
            pl.BlockSpec((2, 2, k4, cout), lambda i, j: (0, 0, 0, 0)),
        ],
        out_specs=(
            pl.BlockSpec((1, 1, wo, cout), lambda i, j: (i, j, 0, 0)),
            pl.BlockSpec((1, 1, 2, cout), lambda i, j: (i, j, 0, 0)),
        ),
        out_shape=(
            jax.ShapeDtypeStruct((n, ho, wo, cout), matmul_dtype),
            jax.ShapeDtypeStruct((n, ho, 2, cout), f32),
        ),
        compiler_params=pltpu.CompilerParams(
            dimension_semantics=("parallel", "parallel"),
            vmem_limit_bytes=vmem_limit),
        cost_estimate=conv1_cost,
    )(xs, xs, w1f)

    # ---- tiny per-channel reduction -> folded scale / shift ---------------
    if use_bn:
        m = n * ho * wo
        mean = jnp.sum(stats[:, :, 0, :], axis=(0, 1)) / m
        ex2 = jnp.sum(stats[:, :, 1, :], axis=(0, 1)) / m
        var = jnp.maximum(ex2 - mean * mean, 0.0)     # biased batch variance
        scale = gamma.astype(f32) * jax.lax.rsqrt(var + 1e-5)
        shift = beta.astype(f32) - mean * scale
        # conv_1 bias is cancelled exactly by the mean subtraction -> dropped.
        # TODO(synk): running_mean / running_var buffer updates of training-
        # mode nn.BatchNorm2d (stateful bookkeeping) are not modeled.
    else:
        scale = jnp.ones((cout,), f32)
        shift = b1.astype(f32)
    scale2d = scale.reshape(1, cout)
    shift2d = shift.reshape(1, cout)

    # ---- kernel 2: affine(BN) + ReLU + conv_2 + bias + ReLU (fused) -------
    y1p = jnp.pad(y1_raw, ((0, 0), (1, 1), (1, 1), (0, 0)))   # (N,Ho+2,Wo+2,C)
    w2f = _rearrange_w2(w2).astype(matmul_dtype)              # (3,3,C,Cout)
    b2_2d = b2.reshape(1, cout).astype(f32)

    conv2_cost = pl.CostEstimate(
        flops=2 * n * ho * wo * (9 * cout) * cout + 6 * n * ho * wo * cout,
        transcendentals=0,
        bytes_accessed=int(3 * y1p.size * itm + n * ho * wo * cout * 4),
    )
    row_in = [
        pl.BlockSpec((1, 1, wo + 2, cout), lambda i, j, k=k: (i, j + k, 0, 0))
        for k in range(3)
    ]
    out = pl.pallas_call(
        _bn_relu_conv2_kernel,
        grid=(n, ho),
        in_specs=row_in + [
            pl.BlockSpec((1, cout), lambda i, j: (0, 0)),            # scale
            pl.BlockSpec((1, cout), lambda i, j: (0, 0)),            # shift
            pl.BlockSpec((3, 3, cout, cout), lambda i, j: (0, 0, 0, 0)),
            pl.BlockSpec((1, cout), lambda i, j: (0, 0)),            # b2
        ],
        out_specs=pl.BlockSpec((1, 1, wo, cout), lambda i, j: (i, j, 0, 0)),
        out_shape=jax.ShapeDtypeStruct((n, ho, wo, cout), f32),
        compiler_params=pltpu.CompilerParams(
            dimension_semantics=("parallel", "parallel"),
            vmem_limit_bytes=vmem_limit),
        cost_estimate=conv2_cost,
    )(y1p, y1p, y1p, scale2d, shift2d, w2f, b2_2d)

    return jnp.transpose(out, (0, 3, 1, 2))                   # back to NCHW


# ---------------------------------------------------------------------------
# Pure-JAX reference (for correctness check)
# ---------------------------------------------------------------------------
def _reference_forward(x, params, use_bn=True):
    dn = ("NCHW", "OIHW", "NCHW")
    y = jax.lax.conv_general_dilated(
        x, params["w1"], window_strides=(2, 2), padding=((1, 1), (1, 1)),
        dimension_numbers=dn)
    y = y + params["b1"][None, :, None, None]
    if use_bn:
        mean = y.mean(axis=(0, 2, 3), keepdims=True)
        var = ((y - mean) ** 2).mean(axis=(0, 2, 3), keepdims=True)
        y = (y - mean) * jax.lax.rsqrt(var + 1e-5)
        y = y * params["gamma"][None, :, None, None] + \
            params["beta"][None, :, None, None]
    y = jnp.maximum(y, 0.0)
    z = jax.lax.conv_general_dilated(
        y, params["w2"], window_strides=(1, 1), padding=((1, 1), (1, 1)),
        dimension_numbers=dn)
    z = z + params["b2"][None, :, None, None]
    return jnp.maximum(z, 0.0)


# ---------------------------------------------------------------------------
if __name__ == "__main__":
    key = jax.random.PRNGKey(0)
    kx, kw1, kb1, kg, kbe, kw2, kb2 = jax.random.split(key, 7)

    N, Cin, Cout, H, W = 2, 4, 8, 16, 16

    params = dict(
        w1=0.1 * jax.random.normal(kw1, (Cout, Cin, 4, 4), jnp.float32),
        b1=0.1 * jax.random.normal(kb1, (Cout,), jnp.float32),
        gamma=1.0 + 0.1 * jax.random.normal(kg, (Cout,), jnp.float32),
        beta=0.1 * jax.random.normal(kbe, (Cout,), jnp.float32),
        w2=0.1 * jax.random.normal(kw2, (Cout, Cout, 3, 3), jnp.float32),
        b2=0.1 * jax.random.normal(kb2, (Cout,), jnp.float32),
    )
    x = jax.random.normal(kx, (N, Cin, H, W), jnp.float32)

    # f32 path, with and without BatchNorm (strict check vs pure-JAX ref).
    for use_bn in (True, False):
        out = jax.block_until_ready(
            downsample_x2_forward(x, params, use_bn=use_bn))
        ref = _reference_forward(x, params, use_bn=use_bn)
        assert out.shape == (N, Cout, H // 2, W // 2), out.shape
        err = float(jnp.max(jnp.abs(out - ref)))
        assert err < 1e-3, f"use_bn={use_bn}: max abs error {err}"

    # bf16-staged matmul operands (halved HBM traffic); loose sanity band.
    out_bf16 = jax.block_until_ready(
        downsample_x2_forward(x, params, use_bn=True,
                              matmul_dtype=jnp.bfloat16))
    ref = _reference_forward(x, params, use_bn=True)
    err_bf16 = float(jnp.max(jnp.abs(out_bf16 - ref)))
    assert err_bf16 < 0.15, f"bf16 max abs error {err_bf16}"

    print("KERNEL_OK")
</pallas_src>

<mosaic_0001>
module attributes {stable_mosaic.version = 11 : i64} {
  func.func @_conv1_rows_kernel(%arg0: i32, %arg1: i32, %arg2: memref<1x1x9x16xf32, #tpu.memory_space<vmem>>, %arg3: memref<1x1x9x16xf32, #tpu.memory_space<vmem>>, %arg4: memref<2x2x16x8xf32, #tpu.memory_space<vmem>>, %arg5: memref<1x1x8x8xf32, #tpu.memory_space<vmem>>, %arg6: memref<1x1x2x8xf32, #tpu.memory_space<vmem>>) attributes {dimension_semantics = [#tpu.dimension_semantics<parallel>, #tpu.dimension_semantics<parallel>], iteration_bounds = array<i64: 2, 8>, scalar_prefetch = 0 : i64, scratch_operands = 0 : i64, tpu.core_type = #tpu.core_type<tc>, window_params = [{transform_indices = @transform_0, window_bounds = array<i64: 1, 1, 9, 16>}, {transform_indices = @transform_1, window_bounds = array<i64: 1, 1, 9, 16>}, {pipeline_mode = #tpu.pipeline_mode<synchronous>, transform_indices = @transform_2, window_bounds = array<i64: 2, 2, 16, 8>}, {transform_indices = @transform_3, window_bounds = array<i64: 1, 1, 8, 8>}, {transform_indices = @transform_4, window_bounds = array<i64: 1, 1, 2, 8>}]} {
    %cst = arith.constant 0.000000e+00 : f32
    %0 = vector.broadcast %cst : f32 to vector<8x8xf32>
    %c0 = arith.constant 0 : index
    %c0_0 = arith.constant 0 : index
    %c0_1 = arith.constant 0 : index
    %c0_2 = arith.constant 0 : index
    %1 = vector.load %arg2[%c0, %c0_0, %c0_1, %c0_2] : memref<1x1x9x16xf32, #tpu.memory_space<vmem>>, vector<1x1x8x16xf32>
    %2 = vector.shape_cast %1 : vector<1x1x8x16xf32> to vector<8x16xf32>
    %c0_3 = arith.constant 0 : index
    %c0_4 = arith.constant 0 : index
    %c0_5 = arith.constant 0 : index
    %c0_6 = arith.constant 0 : index
    %3 = vector.load %arg4[%c0_3, %c0_4, %c0_5, %c0_6] : memref<2x2x16x8xf32, #tpu.memory_space<vmem>>, vector<1x1x16x8xf32>
    %4 = vector.shape_cast %3 : vector<1x1x16x8xf32> to vector<16x8xf32>
    %cst_7 = arith.constant dense<0.000000e+00> : vector<8x8xf32>
    %5 = tpu.matmul %2, %4, %cst_7 {dimension_numbers = #tpu.dot_dimension_numbers<[1], [0], [0], [1], [0, 0, 1, 1], [], []>} : vector<8x16xf32>, vector<16x8xf32>, vector<8x8xf32> -> vector<8x8xf32>
    %6 = arith.addf %0, %5 : vector<8x8xf32>
    %c0_8 = arith.constant 0 : index
    %c0_9 = arith.constant 0 : index
    %c1 = arith.constant 1 : index
    %c0_10 = arith.constant 0 : index
    %7 = vector.load %arg2[%c0_8, %c0_9, %c1, %c0_10] : memref<1x1x9x16xf32, #tpu.memory_space<vmem>>, vector<1x1x8x16xf32>
    %8 = vector.shape_cast %7 : vector<1x1x8x16xf32> to vector<8x16xf32>
    %c0_11 = arith.constant 0 : index
    %c1_12 = arith.constant 1 : index
    %c0_13 = arith.constant 0 : index
    %c0_14 = arith.constant 0 : index
    %9 = vector.load %arg4[%c0_11, %c1_12, %c0_13, %c0_14] : memref<2x2x16x8xf32, #tpu.memory_space<vmem>>, vector<1x1x16x8xf32>
    %10 = vector.shape_cast %9 : vector<1x1x16x8xf32> to vector<16x8xf32>
    %cst_15 = arith.constant dense<0.000000e+00> : vector<8x8xf32>
    %11 = tpu.matmul %8, %10, %cst_15 {dimension_numbers = #tpu.dot_dimension_numbers<[1], [0], [0], [1], [0, 0, 1, 1], [], []>} : vector<8x16xf32>, vector<16x8xf32>, vector<8x8xf32> -> vector<8x8xf32>
    %12 = arith.addf %6, %11 : vector<8x8xf32>
    %c0_16 = arith.constant 0 : index
    %c0_17 = arith.constant 0 : index
    %c0_18 = arith.constant 0 : index
    %c0_19 = arith.constant 0 : index
    %13 = vector.load %arg3[%c0_16, %c0_17, %c0_18, %c0_19] : memref<1x1x9x16xf32, #tpu.memory_space<vmem>>, vector<1x1x8x16xf32>
    %14 = vector.shape_cast %13 : vector<1x1x8x16xf32> to vector<8x16xf32>
    %c1_20 = arith.constant 1 : index
    %c0_21 = arith.constant 0 : index
    %c0_22 = arith.constant 0 : index
    %c0_23 = arith.constant 0 : index
    %15 = vector.load %arg4[%c1_20, %c0_21, %c0_22, %c0_23] : memref<2x2x16x8xf32, #tpu.memory_space<vmem>>, vector<1x1x16x8xf32>
    %16 = vector.shape_cast %15 : vector<1x1x16x8xf32> to vector<16x8xf32>
    %cst_24 = arith.constant dense<0.000000e+00> : vector<8x8xf32>
    %17 = tpu.matmul %14, %16, %cst_24 {dimension_numbers = #tpu.dot_dimension_numbers<[1], [0], [0], [1], [0, 0, 1, 1], [], []>} : vector<8x16xf32>, vector<16x8xf32>, vector<8x8xf32> -> vector<8x8xf32>
    %18 = arith.addf %12, %17 : vector<8x8xf32>
    %c0_25 = arith.constant 0 : index
    %c0_26 = arith.constant 0 : index
    %c1_27 = arith.constant 1 : index
    %c0_28 = arith.constant 0 : index
    %19 = vector.load %arg3[%c0_25, %c0_26, %c1_27, %c0_28] : memref<1x1x9x16xf32, #tpu.memory_space<vmem>>, vector<1x1x8x16xf32>
    %20 = vector.shape_cast %19 : vector<1x1x8x16xf32> to vector<8x16xf32>
    %c1_29 = arith.constant 1 : index
    %c1_30 = arith.constant 1 : index
    %c0_31 = arith.constant 0 : index
    %c0_32 = arith.constant 0 : index
    %21 = vector.load %arg4[%c1_29, %c1_30, %c0_31, %c0_32] : memref<2x2x16x8xf32, #tpu.memory_space<vmem>>, vector<1x1x16x8xf32>
    %22 = vector.shape_cast %21 : vector<1x1x16x8xf32> to vector<16x8xf32>
    %cst_33 = arith.constant dense<0.000000e+00> : vector<8x8xf32>
    %23 = tpu.matmul %20, %22, %cst_33 {dimension_numbers = #tpu.dot_dimension_numbers<[1], [0], [0], [1], [0, 0, 1, 1], [], []>} : vector<8x16xf32>, vector<16x8xf32>, vector<8x8xf32> -> vector<8x8xf32>
    %24 = arith.addf %18, %23 : vector<8x8xf32>
    %c0_34 = arith.constant 0 : index
    %c0_35 = arith.constant 0 : index
    %c0_36 = arith.constant 0 : index
    %c0_37 = arith.constant 0 : index
    %25 = vector.load %arg5[%c0_34, %c0_35, %c0_36, %c0_37] : memref<1x1x8x8xf32, #tpu.memory_space<vmem>>, vector<1x1x8x8xf32>
    %26 = vector.shape_cast %25 : vector<1x1x8x8xf32> to vector<8x8xf32>
    %27 = vector.shape_cast %24 : vector<8x8xf32> to vector<1x1x8x8xf32>
    tpu.vector_store %arg5[%c0_34, %c0_35, %c0_36, %c0_37], %27 {strides = array<i32>} : memref<1x1x8x8xf32, #tpu.memory_space<vmem>>, vector<1x1x8x8xf32>,
    %cst_38 = arith.constant dense<0.000000e+00> : vector<8xf32>
    %28 = vector.multi_reduction <add>, %24, %cst_38 [0] : vector<8x8xf32> to vector<8xf32>
    %29 = vector.shape_cast %28 : vector<8xf32> to vector<1x8xf32>
    %c0_39 = arith.constant 0 : index
    %c0_40 = arith.constant 0 : index
    %c0_41 = arith.constant 0 : index
    %c0_42 = arith.constant 0 : index
    %30 = vector.load %arg6[%c0_39, %c0_40, %c0_41, %c0_42] : memref<1x1x2x8xf32, #tpu.memory_space<vmem>>, vector<1x1x1x8xf32>
    %31 = vector.shape_cast %30 : vector<1x1x1x8xf32> to vector<1x8xf32>
    %32 = vector.shape_cast %29 : vector<1x8xf32> to vector<1x1x1x8xf32>
    tpu.vector_store %arg6[%c0_39, %c0_40, %c0_41, %c0_42], %32 {strides = array<i32>} : memref<1x1x2x8xf32, #tpu.memory_space<vmem>>, vector<1x1x1x8xf32>,
    %33 = arith.mulf %24, %24 : vector<8x8xf32>
    %cst_43 = arith.constant dense<0.000000e+00> : vector<8xf32>
    %34 = vector.multi_reduction <add>, %33, %cst_43 [0] : vector<8x8xf32> to vector<8xf32>
    %35 = vector.shape_cast %34 : vector<8xf32> to vector<1x8xf32>
    %c0_44 = arith.constant 0 : index
    %c0_45 = arith.constant 0 : index
    %c1_46 = arith.constant 1 : index
    %c0_47 = arith.constant 0 : index
    %36 = vector.load %arg6[%c0_44, %c0_45, %c1_46, %c0_47] : memref<1x1x2x8xf32, #tpu.memory_space<vmem>>, vector<1x1x1x8xf32>
    %37 = vector.shape_cast %36 : vector<1x1x1x8xf32> to vector<1x8xf32>
    %38 = vector.shape_cast %35 : vector<1x8xf32> to vector<1x1x1x8xf32>
    tpu.vector_store %arg6[%c0_44, %c0_45, %c1_46, %c0_47], %38 {strides = array<i32>} : memref<1x1x2x8xf32, #tpu.memory_space<vmem>>, vector<1x1x1x8xf32>,
    return
  }
  func.func @transform_0(%arg0: i32, %arg1: i32) -> (i32, i32, i32, i32) {
    %c0_i32 = arith.constant 0 : i32
    %c0_i32_0 = arith.constant 0 : i32
    %c0_i32_1 = arith.constant 0 : i32
    return %arg0, %arg1, %c0_i32, %c0_i32_0 : i32, i32, i32, i32
  }
  func.func @transform_1(%arg0: i32, %arg1: i32) -> (i32, i32, i32, i32) {
    %c1_i32 = arith.constant 1 : i32
    %0 = arith.addi %arg1, %c1_i32 : i32
    %c0_i32 = arith.constant 0 : i32
    %c0_i32_0 = arith.constant 0 : i32
    %c0_i32_1 = arith.constant 0 : i32
    return %arg0, %0, %c0_i32, %c0_i32_0 : i32, i32, i32, i32
  }
  func.func @transform_2(%arg0: i32, %arg1: i32) -> (i32, i32, i32, i32) {
    %c0_i32 = arith.constant 0 : i32
    %c0_i32_0 = arith.constant 0 : i32
    %c0_i32_1 = arith.constant 0 : i32
    %c0_i32_2 = arith.constant 0 : i32
    %c0_i32_3 = arith.constant 0 : i32
    return %c0_i32, %c0_i32_0, %c0_i32_1, %c0_i32_2 : i32, i32, i32, i32
  }
  func.func @transform_3(%arg0: i32, %arg1: i32) -> (i32, i32, i32, i32) {
    %c0_i32 = arith.constant 0 : i32
    %c0_i32_0 = arith.constant 0 : i32
    %c0_i32_1 = arith.constant 0 : i32
    return %arg0, %arg1, %c0_i32, %c0_i32_0 : i32, i32, i32, i32
  }
  func.func @transform_4(%arg0: i32, %arg1: i32) -> (i32, i32, i32, i32) {
    %c0_i32 = arith.constant 0 : i32
    %c0_i32_0 = arith.constant 0 : i32
    %c0_i32_1 = arith.constant 0 : i32
    return %arg0, %arg1, %c0_i32, %c0_i32_0 : i32, i32, i32, i32
  }
}

module attributes {stable_mosaic.version = 11 : i64} {
  func.func @_bn_relu_conv2_kernel(%arg0: i32, %arg1: i32, %arg2: memref<1x1x10x8xf32, #tpu.memory_space<vmem>>, %arg3: memref<1x1x10x8xf32, #tpu.memory_space<vmem>>, %arg4: memref<1x1x10x8xf32, #tpu.memory_space<vmem>>, %arg5: memref<1x8xf32, #tpu.memory_space<vmem>>, %arg6: memref<1x8xf32, #tpu.memory_space<vmem>>, %arg7: memref<3x3x8x8xf32, #tpu.memory_space<vmem>>, %arg8: memref<1x8xf32, #tpu.memory_space<vmem>>, %arg9: memref<1x1x8x8xf32, #tpu.memory_space<vmem>>) attributes {dimension_semantics = [#tpu.dimension_semantics<parallel>, #tpu.dimension_semantics<parallel>], iteration_bounds = array<i64: 2, 8>, scalar_prefetch = 0 : i64, scratch_operands = 0 : i64, tpu.core_type = #tpu.core_type<tc>, window_params = [{transform_indices = @transform_0, window_bounds = array<i64: 1, 1, 10, 8>}, {transform_indices = @transform_1, window_bounds = array<i64: 1, 1, 10, 8>}, {transform_indices = @transform_2, window_bounds = array<i64: 1, 1, 10, 8>}, {pipeline_mode = #tpu.pipeline_mode<synchronous>, transform_indices = @transform_3, window_bounds = array<i64: 1, 8>}, {pipeline_mode = #tpu.pipeline_mode<synchronous>, transform_indices = @transform_4, window_bounds = array<i64: 1, 8>}, {pipeline_mode = #tpu.pipeline_mode<synchronous>, transform_indices = @transform_5, window_bounds = array<i64: 3, 3, 8, 8>}, {pipeline_mode = #tpu.pipeline_mode<synchronous>, transform_indices = @transform_6, window_bounds = array<i64: 1, 8>}, {transform_indices = @transform_7, window_bounds = array<i64: 1, 1, 8, 8>}]} {
    %c0 = arith.constant 0 : index
    %c0_0 = arith.constant 0 : index
    %0 = vector.load %arg5[%c0, %c0_0] : memref<1x8xf32, #tpu.memory_space<vmem>>, vector<1x8xf32>
    %c0_1 = arith.constant 0 : index
    %c0_2 = arith.constant 0 : index
    %1 = vector.load %arg6[%c0_1, %c0_2] : memref<1x8xf32, #tpu.memory_space<vmem>>, vector<1x8xf32>
    %2 = tpu.iota {dimensions = array<i32: 0>} : vector<10x1xi32>
    %c1_i32 = arith.constant 1 : i32
    %3 = vector.broadcast %c1_i32 : i32 to vector<10x1xi32>
    %4 = arith.cmpi sge, %2, %3 : vector<10x1xi32>
    %c8_i32 = arith.constant 8 : i32
    %5 = vector.broadcast %c8_i32 : i32 to vector<10x1xi32>
    %6 = arith.cmpi sle, %2, %5 : vector<10x1xi32>
    %7 = arith.andi %4, %6 : vector<10x1xi1>
    %8 = arith.extui %7 : vector<10x1xi1> to vector<10x1xi32>
    %9 = arith.sitofp %8 : vector<10x1xi32> to vector<10x1xf32>
    %cst = arith.constant 0.000000e+00 : f32
    %10 = vector.broadcast %cst : f32 to vector<8x8xf32>
    %c0_3 = arith.constant 0 : index
    %c0_4 = arith.constant 0 : index
    %11 = vector.load %arg8[%c0_3, %c0_4] : memref<1x8xf32, #tpu.memory_space<vmem>>, vector<1x8xf32>
    %12 = vector.broadcast %11 : vector<1x8xf32> to vector<8x8xf32>
    %13 = arith.addf %10, %12 : vector<8x8xf32>
    %c0_i32 = arith.constant 0 : i32
    %14 = arith.addi %arg1, %c0_i32 : i32
    %c1_i32_5 = arith.constant 1 : i32
    %15 = arith.cmpi sge, %14, %c1_i32_5 : i32
    %c8_i32_6 = arith.constant 8 : i32
    %16 = arith.cmpi sle, %14, %c8_i32_6 : i32
    %17 = arith.andi %15, %16 : i1
    %cst_7 = arith.constant 1.000000e+00 : f32
    %cst_8 = arith.constant 0.000000e+00 : f32
    %18 = arith.select %17, %cst_7, %cst_8 : f32
    %c0_9 = arith.constant 0 : index
    %c0_10 = arith.constant 0 : index
    %c0_11 = arith.constant 0 : index
    %c0_12 = arith.constant 0 : index
    %19 = vector.load %arg2[%c0_9, %c0_10, %c0_11, %c0_12] : memref<1x1x10x8xf32, #tpu.memory_space<vmem>>, vector<1x1x10x8xf32>
    %20 = vector.shape_cast %19 : vector<1x1x10x8xf32> to vector<10x8xf32>
    %21 = vector.broadcast %0 : vector<1x8xf32> to vector<10x8xf32>
    %22 = arith.mulf %20, %21 : vector<10x8xf32>
    %23 = vector.broadcast %1 : vector<1x8xf32> to vector<10x8xf32>
    %24 = arith.addf %22, %23 : vector<10x8xf32>
    %cst_13 = arith.constant 0.000000e+00 : f32
    %25 = vector.broadcast %cst_13 : f32 to vector<10x8xf32>
    %26 = arith.maximumf %24, %25 : vector<10x8xf32>
    %27 = vector.broadcast %9 : vector<10x1xf32> to vector<10x8xf32>
    %28 = arith.mulf %26, %27 : vector<10x8xf32>
    %29 = vector.broadcast %18 : f32 to vector<10x8xf32>
    %30 = arith.mulf %28, %29 : vector<10x8xf32>
    %31 = vector.extract_strided_slice %30 {offsets = [0, 0], sizes = [8, 8], strides = [1, 1]} : vector<10x8xf32> to vector<8x8xf32>
    %c0_14 = arith.constant 0 : index
    %c0_15 = arith.constant 0 : index
    %c0_16 = arith.constant 0 : index
    %c0_17 = arith.constant 0 : index
    %32 = vector.load %arg7[%c0_14, %c0_15, %c0_16, %c0_17] : memref<3x3x8x8xf32, #tpu.memory_space<vmem>>, vector<1x1x8x8xf32>
    %33 = vector.shape_cast %32 : vector<1x1x8x8xf32> to vector<8x8xf32>
    %cst_18 = arith.constant dense<0.000000e+00> : vector<8x8xf32>
    %34 = tpu.matmul %31, %33, %cst_18 {dimension_numbers = #tpu.dot_dimension_numbers<[1], [0], [0], [1], [0, 0, 1, 1], [], []>} : vector<8x8xf32>, vector<8x8xf32>, vector<8x8xf32> -> vector<8x8xf32>
    %35 = arith.addf %13, %34 : vector<8x8xf32>
    %36 = vector.extract_strided_slice %30 {offsets = [1, 0], sizes = [8, 8], strides = [1, 1]} : vector<10x8xf32> to vector<8x8xf32>
    %c0_19 = arith.constant 0 : index
    %c1 = arith.constant 1 : index
    %c0_20 = arith.constant 0 : index
    %c0_21 = arith.constant 0 : index
    %37 = vector.load %arg7[%c0_19, %c1, %c0_20, %c0_21] : memref<3x3x8x8xf32, #tpu.memory_space<vmem>>, vector<1x1x8x8xf32>
    %38 = vector.shape_cast %37 : vector<1x1x8x8xf32> to vector<8x8xf32>
    %cst_22 = arith.constant dense<0.000000e+00> : vector<8x8xf32>
    %39 = tpu.matmul %36, %38, %cst_22 {dimension_numbers = #tpu.dot_dimension_numbers<[1], [0], [0], [1], [0, 0, 1, 1], [], []>} : vector<8x8xf32>, vector<8x8xf32>, vector<8x8xf32> -> vector<8x8xf32>
    %40 = arith.addf %35, %39 : vector<8x8xf32>
    %41 = vector.extract_strided_slice %30 {offsets = [2, 0], sizes = [8, 8], strides = [1, 1]} : vector<10x8xf32> to vector<8x8xf32>
    %c0_23 = arith.constant 0 : index
    %c2 = arith.constant 2 : index
    %c0_24 = arith.constant 0 : index
    %c0_25 = arith.constant 0 : index
    %42 = vector.load %arg7[%c0_23, %c2, %c0_24, %c0_25] : memref<3x3x8x8xf32, #tpu.memory_space<vmem>>, vector<1x1x8x8xf32>
    %43 = vector.shape_cast %42 : vector<1x1x8x8xf32> to vector<8x8xf32>
    %cst_26 = arith.constant dense<0.000000e+00> : vector<8x8xf32>
    %44 = tpu.matmul %41, %43, %cst_26 {dimension_numbers = #tpu.dot_dimension_numbers<[1], [0], [0], [1], [0, 0, 1, 1], [], []>} : vector<8x8xf32>, vector<8x8xf32>, vector<8x8xf32> -> vector<8x8xf32>
    %45 = arith.addf %40, %44 : vector<8x8xf32>
    %c1_i32_27 = arith.constant 1 : i32
    %46 = arith.addi %arg1, %c1_i32_27 : i32
    %c1_i32_28 = arith.constant 1 : i32
    %47 = arith.cmpi sge, %46, %c1_i32_28 : i32
    %c8_i32_29 = arith.constant 8 : i32
    %48 = arith.cmpi sle, %46, %c8_i32_29 : i32
    %49 = arith.andi %47, %48 : i1
    %cst_30 = arith.constant 1.000000e+00 : f32
    %cst_31 = arith.constant 0.000000e+00 : f32
    %50 = arith.select %49, %cst_30, %cst_31 : f32
    %c0_32 = arith.constant 0 : index
    %c0_33 = arith.constant 0 : index
    %c0_34 = arith.constant 0 : index
    %c0_35 = arith.constant 0 : index
    %51 = vector.load %arg3[%c0_32, %c0_33, %c0_34, %c0_35] : memref<1x1x10x8xf32, #tpu.memory_space<vmem>>, vector<1x1x10x8xf32>
    %52 = vector.shape_cast %51 : vector<1x1x10x8xf32> to vector<10x8xf32>
    %53 = vector.broadcast %0 : vector<1x8xf32> to vector<10x8xf32>
    %54 = arith.mulf %52, %53 : vector<10x8xf32>
    %55 = vector.broadcast %1 : vector<1x8xf32> to vector<10x8xf32>
    %56 = arith.addf %54, %55 : vector<10x8xf32>
    %cst_36 = arith.constant 0.000000e+00 : f32
    %57 = vector.broadcast %cst_36 : f32 to vector<10x8xf32>
    %58 = arith.maximumf %56, %57 : vector<10x8xf32>
    %59 = vector.broadcast %9 : vector<10x1xf32> to vector<10x8xf32>
    %60 = arith.mulf %58, %59 : vector<10x8xf32>
    %61 = vector.broadcast %50 : f32 to vector<10x8xf32>
    %62 = arith.mulf %60, %61 : vector<10x8xf32>
    %63 = vector.extract_strided_slice %62 {offsets = [0, 0], sizes = [8, 8], strides = [1, 1]} : vector<10x8xf32> to vector<8x8xf32>
    %c1_37 = arith.constant 1 : index
    %c0_38 = arith.constant 0 : index
    %c0_39 = arith.constant 0 : index
    %c0_40 = arith.constant 0 : index
    %64 = vector.load %arg7[%c1_37, %c0_38, %c0_39, %c0_40] : memref<3x3x8x8xf32, #tpu.memory_space<vmem>>, vector<1x1x8x8xf32>
    %65 = vector.shape_cast %64 : vector<1x1x8x8xf32> to vector<8x8xf32>
    %cst_41 = arith.constant dense<0.000000e+00> : vector<8x8xf32>
    %66 = tpu.matmul %63, %65, %cst_41 {dimension_numbers = #tpu.dot_dimension_numbers<[1], [0], [0], [1], [0, 0, 1, 1], [], []>} : vector<8x8xf32>, vector<8x8xf32>, vector<8x8xf32> -> vector<8x8xf32>
    %67 = arith.addf %45, %66 : vector<8x8xf32>
    %68 = vector.extract_strided_slice %62 {offsets = [1, 0], sizes = [8, 8], strides = [1, 1]} : vector<10x8xf32> to vector<8x8xf32>
    %c1_42 = arith.constant 1 : index
    %c1_43 = arith.constant 1 : index
    %c0_44 = arith.constant 0 : index
    %c0_45 = arith.constant 0 : index
    %69 = vector.load %arg7[%c1_42, %c1_43, %c0_44, %c0_45] : memref<3x3x8x8xf32, #tpu.memory_space<vmem>>, vector<1x1x8x8xf32>
    %70 = vector.shape_cast %69 : vector<1x1x8x8xf32> to vector<8x8xf32>
    %cst_46 = arith.constant dense<0.000000e+00> : vector<8x8xf32>
    %71 = tpu.matmul %68, %70, %cst_46 {dimension_numbers = #tpu.dot_dimension_numbers<[1], [0], [0], [1], [0, 0, 1, 1], [], []>} : vector<8x8xf32>, vector<8x8xf32>, vector<8x8xf32> -> vector<8x8xf32>
    %72 = arith.addf %67, %71 : vector<8x8xf32>
    %73 = vector.extract_strided_slice %62 {offsets = [2, 0], sizes = [8, 8], strides = [1, 1]} : vector<10x8xf32> to vector<8x8xf32>
    %c1_47 = arith.constant 1 : index
    %c2_48 = arith.constant 2 : index
    %c0_49 = arith.constant 0 : index
    %c0_50 = arith.constant 0 : index
    %74 = vector.load %arg7[%c1_47, %c2_48, %c0_49, %c0_50] : memref<3x3x8x8xf32, #tpu.memory_space<vmem>>, vector<1x1x8x8xf32>
    %75 = vector.shape_cast %74 : vector<1x1x8x8xf32> to vector<8x8xf32>
    %cst_51 = arith.constant dense<0.000000e+00> : vector<8x8xf32>
    %76 = tpu.matmul %73, %75, %cst_51 {dimension_numbers = #tpu.dot_dimension_numbers<[1], [0], [0], [1], [0, 0, 1, 1], [], []>} : vector<8x8xf32>, vector<8x8xf32>, vector<8x8xf32> -> vector<8x8xf32>
    %77 = arith.addf %72, %76 : vector<8x8xf32>
    %c2_i32 = arith.constant 2 : i32
    %78 = arith.addi %arg1, %c2_i32 : i32
    %c1_i32_52 = arith.constant 1 : i32
    %79 = arith.cmpi sge, %78, %c1_i32_52 : i32
    %c8_i32_53 = arith.constant 8 : i32
    %80 = arith.cmpi sle, %78, %c8_i32_53 : i32
    %81 = arith.andi %79, %80 : i1
    %cst_54 = arith.constant 1.000000e+00 : f32
    %cst_55 = arith.constant 0.000000e+00 : f32
    %82 = arith.select %81, %cst_54, %cst_55 : f32
    %c0_56 = arith.constant 0 : index
    %c0_57 = arith.constant 0 : index
    %c0_58 = arith.constant 0 : index
    %c0_59 = arith.constant 0 : index
    %83 = vector.load %arg4[%c0_56, %c0_57, %c0_58, %c0_59] : memref<1x1x10x8xf32, #tpu.memory_space<vmem>>, vector<1x1x10x8xf32>
    %84 = vector.shape_cast %83 : vector<1x1x10x8xf32> to vector<10x8xf32>
    %85 = vector.broadcast %0 : vector<1x8xf32> to vector<10x8xf32>
    %86 = arith.mulf %84, %85 : vector<10x8xf32>
    %87 = vector.broadcast %1 : vector<1x8xf32> to vector<10x8xf32>
    %88 = arith.addf %86, %87 : vector<10x8xf32>
    %cst_60 = arith.constant 0.000000e+00 : f32
    %89 = vector.broadcast %cst_60 : f32 to vector<10x8xf32>
    %90 = arith.maximumf %88, %89 : vector<10x8xf32>
    %91 = vector.broadcast %9 : vector<10x1xf32> to vector<10x8xf32>
    %92 = arith.mulf %90, %91 : vector<10x8xf32>
    %93 = vector.broadcast %82 : f32 to vector<10x8xf32>
    %94 = arith.mulf %92, %93 : vector<10x8xf32>
    %95 = vector.extract_strided_slice %94 {offsets = [0, 0], sizes = [8, 8], strides = [1, 1]} : vector<10x8xf32> to vector<8x8xf32>
    %c2_61 = arith.constant 2 : index
    %c0_62 = arith.constant 0 : index
    %c0_63 = arith.constant 0 : index
    %c0_64 = arith.constant 0 : index
    %96 = vector.load %arg7[%c2_61, %c0_62, %c0_63, %c0_64] : memref<3x3x8x8xf32, #tpu.memory_space<vmem>>, vector<1x1x8x8xf32>
    %97 = vector.shape_cast %96 : vector<1x1x8x8xf32> to vector<8x8xf32>
    %cst_65 = arith.constant dense<0.000000e+00> : vector<8x8xf32>
    %98 = tpu.matmul %95, %97, %cst_65 {dimension_numbers = #tpu.dot_dimension_numbers<[1], [0], [0], [1], [0, 0, 1, 1], [], []>} : vector<8x8xf32>, vector<8x8xf32>, vector<8x8xf32> -> vector<8x8xf32>
    %99 = arith.addf %77, %98 : vector<8x8xf32>
    %100 = vector.extract_strided_slice %94 {offsets = [1, 0], sizes = [8, 8], strides = [1, 1]} : vector<10x8xf32> to vector<8x8xf32>
    %c2_66 = arith.constant 2 : index
    %c1_67 = arith.constant 1 : index
    %c0_68 = arith.constant 0 : index
    %c0_69 = arith.constant 0 : index
    %101 = vector.load %arg7[%c2_66, %c1_67, %c0_68, %c0_69] : memref<3x3x8x8xf32, #tpu.memory_space<vmem>>, vector<1x1x8x8xf32>
    %102 = vector.shape_cast %101 : vector<1x1x8x8xf32> to vector<8x8xf32>
    %cst_70 = arith.constant dense<0.000000e+00> : vector<8x8xf32>
    %103 = tpu.matmul %100, %102, %cst_70 {dimension_numbers = #tpu.dot_dimension_numbers<[1], [0], [0], [1], [0, 0, 1, 1], [], []>} : vector<8x8xf32>, vector<8x8xf32>, vector<8x8xf32> -> vector<8x8xf32>
    %104 = arith.addf %99, %103 : vector<8x8xf32>
    %105 = vector.extract_strided_slice %94 {offsets = [2, 0], sizes = [8, 8], strides = [1, 1]} : vector<10x8xf32> to vector<8x8xf32>
    %c2_71 = arith.constant 2 : index
    %c2_72 = arith.constant 2 : index
    %c0_73 = arith.constant 0 : index
    %c0_74 = arith.constant 0 : index
    %106 = vector.load %arg7[%c2_71, %c2_72, %c0_73, %c0_74] : memref<3x3x8x8xf32, #tpu.memory_space<vmem>>, vector<1x1x8x8xf32>
    %107 = vector.shape_cast %106 : vector<1x1x8x8xf32> to vector<8x8xf32>
    %cst_75 = arith.constant dense<0.000000e+00> : vector<8x8xf32>
    %108 = tpu.matmul %105, %107, %cst_75 {dimension_numbers = #tpu.dot_dimension_numbers<[1], [0], [0], [1], [0, 0, 1, 1], [], []>} : vector<8x8xf32>, vector<8x8xf32>, vector<8x8xf32> -> vector<8x8xf32>
    %109 = arith.addf %104, %108 : vector<8x8xf32>
    %cst_76 = arith.constant 0.000000e+00 : f32
    %110 = vector.broadcast %cst_76 : f32 to vector<8x8xf32>
    %111 = arith.maximumf %109, %110 : vector<8x8xf32>
    %c0_77 = arith.constant 0 : index
    %c0_78 = arith.constant 0 : index
    %c0_79 = arith.constant 0 : index
    %c0_80 = arith.constant 0 : index
    %112 = vector.load %arg9[%c0_77, %c0_78, %c0_79, %c0_80] : memref<1x1x8x8xf32, #tpu.memory_space<vmem>>, vector<1x1x8x8xf32>
    %113 = vector.shape_cast %112 : vector<1x1x8x8xf32> to vector<8x8xf32>
    %114 = vector.shape_cast %111 : vector<8x8xf32> to vector<1x1x8x8xf32>
    tpu.vector_store %arg9[%c0_77, %c0_78, %c0_79, %c0_80], %114 {strides = array<i32>} : memref<1x1x8x8xf32, #tpu.memory_space<vmem>>, vector<1x1x8x8xf32>,
    return
  }
  func.func @transform_0(%arg0: i32, %arg1: i32) -> (i32, i32, i32, i32) {
    %c0_i32 = arith.constant 0 : i32
    %0 = arith.addi %arg1, %c0_i32 : i32
    %c0_i32_0 = arith.constant 0 : i32
    %c0_i32_1 = arith.constant 0 : i32
    %c0_i32_2 = arith.constant 0 : i32
    return %arg0, %0, %c0_i32_0, %c0_i32_1 : i32, i32, i32, i32
  }
  func.func @transform_1(%arg0: i32, %arg1: i32) -> (i32, i32, i32, i32) {
    %c1_i32 = arith.constant 1 : i32
    %0 = arith.addi %arg1, %c1_i32 : i32
    %c0_i32 = arith.constant 0 : i32
    %c0_i32_0 = arith.constant 0 : i32
    %c0_i32_1 = arith.constant 0 : i32
    return %arg0, %0, %c0_i32, %c0_i32_0 : i32, i32, i32, i32
  }
  func.func @transform_2(%arg0: i32, %arg1: i32) -> (i32, i32, i32, i32) {
    %c2_i32 = arith.constant 2 : i32
    %0 = arith.addi %arg1, %c2_i32 : i32
    %c0_i32 = arith.constant 0 : i32
    %c0_i32_0 = arith.constant 0 : i32
    %c0_i32_1 = arith.constant 0 : i32
    return %arg0, %0, %c0_i32, %c0_i32_0 : i32, i32, i32, i32
  }
  func.func @transform_3(%arg0: i32, %arg1: i32) -> (i32, i32) {
    %c0_i32 = arith.constant 0 : i32
    %c0_i32_0 = arith.constant 0 : i32
    %c0_i32_1 = arith.constant 0 : i32
    return %c0_i32, %c0_i32_0 : i32, i32
  }
  func.func @transform_4(%arg0: i32, %arg1: i32) -> (i32, i32) {
    %c0_i32 = arith.constant 0 : i32
    %c0_i32_0 = arith.constant 0 : i32
    %c0_i32_1 = arith.constant 0 : i32
    return %c0_i32, %c0_i32_0 : i32, i32
  }
  func.func @transform_5(%arg0: i32, %arg1: i32) -> (i32, i32, i32, i32) {
    %c0_i32 = arith.constant 0 : i32
    %c0_i32_0 = arith.constant 0 : i32
    %c0_i32_1 = arith.constant 0 : i32
    %c0_i32_2 = arith.constant 0 : i32
    %c0_i32_3 = arith.constant 0 : i32
    return %c0_i32, %c0_i32_0, %c0_i32_1, %c0_i32_2 : i32, i32, i32, i32
  }
  func.func @transform_6(%arg0: i32, %arg1: i32) -> (i32, i32) {
    %c0_i32 = arith.constant 0 : i32
    %c0_i32_0 = arith.constant 0 : i32
    %c0_i32_1 = arith.constant 0 : i32
    return %c0_i32, %c0_i32_0 : i32, i32
  }
  func.func @transform_7(%arg0: i32, %arg1: i32) -> (i32, i32, i32, i32) {
    %c0_i32 = arith.constant 0 : i32
    %c0_i32_0 = arith.constant 0 : i32
    %c0_i32_1 = arith.constant 0 : i32
    return %arg0, %arg1, %c0_i32, %c0_i32_0 : i32, i32, i32, i32
  }
}

</mosaic_0001>

<bundles_post_ra>
// kernel: downsample_x2_forward.2
= control target key start
LH: loop header
LB: loop body
LE: loop exit
PB: predicated region body
PF: predicated region fallthrough
CT: control target
= control target key end

     0   :  { %s712_s15 = smov 0   ;;  %s714_s16 = smov 0   ;;  %s804_s0 = inlined_call_operand.vmem [shape: f32[2,9,9,16], index: 0, kind: input, shape index: {}, may-alias: {0,1}]   ;;  %s805_s1 = inlined_call_operand.vmem [shape: f32[2,9,9,16], index: 1, kind: input, shape index: {}, may-alias: {0,1}]   ;;  %s806_s2 = inlined_call_operand.vmem [shape: f32[2,2,16,8], index: 2, kind: input, shape index: {}]   ;;  %s807_s3 = inlined_call_operand.vmem [shape: f32[2,8,8,8], index: 3, kind: output, shape index: {0}]   ;;  %s808_s4 = inlined_call_operand.vmem [shape: f32[2,8,2,8], index: 4, kind: output, shape index: {1}]  }
   0x1   :  { %s716_s17 = smov 0   ;;  %s718_s18 = smov 0  }
   0x2   :  { %s720_s19 = smov 0  }
   0x3 LB: > { %s24_s20 = sadd.s32 1, %s677_s17  ;;  %s27_s21 = sadd.s32 1, %s681_s18  ;;  %s685_s19 = sphi %s720_s19, %s15_s19   ;;  %s681_s18 = sphi %s718_s18, %s812_s18   ;;  %s677_s17 = sphi %s716_s17, %s811_s17   ;;  %s673_s16 = sphi %s714_s16, %s810_s16   ;;  %s669_s15 = sphi %s712_s15, %s809_s15  }
   0x4   : > { %p25_p0 = scmp.ge.s32.totalorder %s24_s20, 8  ;;  %p585_p1 = scmp.ge.s32.totalorder %s685_s19, 1 }
   0x5   : > { %p207_p2 = scmp.lt.s32.totalorder %s685_s19, 17 }
   0x6   : > { %s814_s20 = smov (%p25_p0, %s24_s20), 0  ;;  %s816_s21 = smov (!%p25_p0, %s27_s21), %s681_s18 }
   0x7   : > { %p208_p3 = pnand %p585_p1, %p207_p2  ;;  %p29_p4 = scmp.ge.s32.totalorder %s816_s21, 2 }
   0x8   : > { %p258_p5 = scmp.lt.s32.totalorder (!%p208_p3), %s673_s16, 1  ;;  %s267_s28 = sadd.s32 (!%p208_p3), 1, %s669_s15 }
   0x9   : > { %s818_s21 = smov (%p29_p4, %s816_s21), 0  ;;  %211 = sbr.rel (%p208_p3) target bundleno = 173 (0xad), region = 32 }
   0xa   : > { %p270_p6 = scmp.lt.s32.totalorder (!%p208_p3), %s267_s28, 8  ;;  %p260_p7 = scmp.lt.s32.totalorder (!%p208_p3), %s669_s15, 8 }
   0xb   : > { %p280_p8 = scmp.lt.s32.totalorder (!%p208_p3), %s669_s15, 7 }
   0xe   : > { %v599_v0 = vld [vmem:[%s806_s2 + $0x28] sm:$0xff]  ;;  %v598_v1 = vld [vmem:[%s806_s2 + $0x20] sm:$0xff]  ;;  %v602_v2 = vld [vmem:[%s806_s2 + $0x38] sm:$0xff]  ;;  %s820_s16 = smov (!%p258_p5, %s673_s16), 1  ;;  %s822_s28 = smov (!%p270_p6, %s267_s28), 8  ;;  %vm301_vm0 = vcmask 130048  }
   0xf   : > { %369 = vmatpush.msra.mxu2 %v599_v0  ;;  %397 = vmatpush.msra.mxu3 %v602_v2  ;;  %v595_v3 = vld [vmem:[%s806_s2 + $0x18] sm:$0xff]  ;;  %v296_v4 = vld [vmem:[%s806_s2 + $0x8] sm:$0xff]  ;;  %v601_v5 = vld [vmem:[%s806_s2 + $0x30] sm:$0xff]  ;;  %s606_s13 = smul.u32 18, %s820_s16  ;;  %s588_s14 = sshll.u32 %s822_s28, 1  ;;  %vm404_vm1 = vcmask 64512  }
  0x10   : > { %319 = vmatpush.msra.mxu0 %v595_v3  ;;  %342 = vmatpush.msra.mxu1 %v296_v4  ;;  %v594_v6 = vld [vmem:[%s806_s2 + $0x10] sm:$0xff]  ;;  %v295_v7 = vld [vmem:[%s806_s2] sm:$0xff]  ;;  %s261_s27 = scalar_select %p260_p7, %s669_s15, 8  ;;  %vm413_vm2 = vcmask 57344  }
  0x11   : > { %370 = vmatpush.msra.mxu2 %v598_v1  ;;  %398 = vmatpush.msra.mxu3 %v601_v5  ;;  %s274_s22 = sadd.s32 %s606_s13, %s588_s14  ;;  %s824_s15 = smov (!%p280_p8, %s669_s15), 7 }
  0x12   : > { %320 = vmatpush.msra.mxu0 %v594_v6  ;;  %343 = vmatpush.msra.mxu1 %v295_v7  ;;  %s589_s23 = sshll.u32 %s274_s22, 3  ;;  %s586_s29 = sshll.u32 %s261_s27, 1 }
  0x13   : > { %s276_s26 = scalar_lea.vmem %s805_s1, %s589_s23  ;;  %s264_s30 = sadd.s32 %s606_s13, %s586_s29 }
  0x14   : > { %v348_v8 = vld [vmem:[%s276_s26] sm:$0xff]  ;;  %s587_s5 = sshll.u32 %s264_s30, 3  ;;  %s590_s8 = sshll.u32 %s820_s16, 3 }
  0x15   : > { %v376_v9 = vld [vmem:[%s276_s26 + $0x1] sm:$0xff]  ;;  %600 = vmatmul.msk.f32.vlgmr.msra.gmra.mxu2 %vm301_vm0, %v348_v8  ;;  %s266_s7 = scalar_lea.vmem %s804_s0, %s587_s5  ;;  %s283_s9 = sadd.s32 %s590_s8, %s824_s15 }
  0x16   : > { %603 = vmatmul.msk.f32.vlgmr.msra.gmra.mxu3 %vm301_vm0, %v376_v9  ;;  %v297_v10 = vld [vmem:[%s266_s7 + $0x1] sm:$0xff]  ;;  %s591_s10 = sshll.u32 %s283_s9, 3  ;;  %s593_s15 = sshll.u32 %s283_s9, 1 }
  0x17   : > { %v294_v11 = vld [vmem:[%s266_s7] sm:$0xff]  ;;  %596 = vmatmul.msk.f32.vlgmr.msra.gmra.mxu0 %vm301_vm0, %v297_v10  ;;  %s285_s13 = scalar_lea.vmem %s807_s3, %s591_s10  ;;  %s293_s22 = scalar_lea.vmem %s808_s4, %s593_s15 }
  0x18   : > { %597 = vmatmul.msk.f32.vlgmr.msra.gmra.mxu1 %vm301_vm0, %v294_v11 }
  0x94   : > { %v322_v12 = vpop.f32.mrf.mxu0 }
  0x95   : > { %v345_v13 = vpop.f32.mrf.mxu1 }
  0x96   : > { %v346_v14 = vadd.f32 %v345_v13, %v322_v12 }
  0x98   : > { %v372_v15 = vpop.f32.mrf.mxu2 }
  0x99   : > { %v400_v16 = vpop.f32.mrf.mxu3  ;;  %v375_v17 = vadd.f32 %v372_v15, %v346_v14 }
  0x9b   : > { %v403_v18 = vadd.f32 %v400_v16, %v375_v17 }
  0x9d   : > { %405 = vst.msk [vmem:[%s285_s13] sm:$0xff] %vm404_vm1, %v403_v18  ;;  %v406_v19 = vsel %vm404_vm1, %v403_v18, 0.0  ;;  %v415_v20 = vmul.f32 %v403_v18, %v403_v18 }
  0x9e   : > { %v407_v21 = vrot.slane %v406_v19, 4 }
  0x9f   : > { %v416_v22 = vsel %vm404_vm1, %v415_v20, 0.0 }
  0xa0   : > { %v408_v23 = vadd.f32 %v407_v21, %v406_v19  ;;  %v417_v24 = vrot.slane %v416_v22, 4 }
  0xa2   : > { %v409_v25 = vrot.slane %v408_v23, 2  ;;  %v418_v26 = vadd.f32 %v417_v24, %v416_v22 }
  0xa4   : > { %v410_v27 = vadd.f32 %v409_v25, %v408_v23  ;;  %v419_v28 = vrot.slane %v418_v26, 2 }
  0xa6   : > { %v411_v29 = vrot.slane %v410_v27, 1  ;;  %v420_v30 = vadd.f32 %v419_v28, %v418_v26 }
  0xa8   : > { %v412_v31 = vadd.f32 %v411_v29, %v410_v27  ;;  %v421_v32 = vrot.slane %v420_v30, 1 }
  0xaa   : > { %414 = vst.msk [vmem:[%s293_s22] sm:$0x1] %vm413_vm2, %v412_v31  ;;  %v422_v33 = vadd.f32 %v421_v32, %v420_v30 }
  0xac   : > { %423 = vst.msk [vmem:[%s293_s22 + $0x1] sm:$0x1] %vm413_vm2, %v422_v33 }
  0xad PF: > { %s15_s19 = sadd.s32 1, %s685_s19   ;;  %s809_s15 = smov %s677_s17 }
  0xae   : > { %p12_p9 = scmp.ge.s32.totalorder %s15_s19, 18   ;;  %s810_s16 = smov %s681_s18 }
  0xaf   : > { %s811_s17 = smov %s814_s20  ;;  %s812_s18 = smov %s818_s21 }
  0xb0   :  { %14 = sbr.rel (!%p12_p9) target bundleno = 3 (0x3), region = 80 }

// kernel: downsample_x2_forward.3
= control target key start
LH: loop header
LB: loop body
LE: loop exit
PB: predicated region body
PF: predicated region fallthrough
CT: control target
= control target key end

     0   :  { %s1024_s24 = smov 0   ;;  %s1026_s25 = smov 0   ;;  %s1220_s0 = inlined_call_operand.vmem [shape: f32[2,10,10,8], index: 0, kind: input, shape index: {}, may-alias: {0,1,2}]   ;;  %s1221_s1 = inlined_call_operand.vmem [shape: f32[2,10,10,8], index: 1, kind: input, shape index: {}, may-alias: {0,1,2}]   ;;  %s1222_s2 = inlined_call_operand.vmem [shape: f32[2,10,10,8], index: 2, kind: input, shape index: {}, may-alias: {0,1,2}]   ;;  %s1223_s3 = inlined_call_operand.vmem [shape: f32[1,8], index: 3, kind: input, shape index: {}]   ;;  %s1224_s4 = inlined_call_operand.vmem [shape: f32[1,8], index: 4, kind: input, shape index: {}]   ;;  %s1225_s5 = inlined_call_operand.vmem [shape: f32[3,3,8,8], index: 5, kind: input, shape index: {}]   ;;  %s1226_s6 = inlined_call_operand.vmem [shape: f32[1,8], index: 6, kind: input, shape index: {}]   ;;  %s1227_s7 = inlined_call_operand.vmem [shape: f32[2,8,8,8], index: 7, kind: output, shape index: {}]  }
   0x1   :  { %s1028_s26 = smov 0   ;;  %s1030_s27 = smov 0  }
   0x2   :  { %s1032_s28 = smov 0  }
   0x3 LB: > { %s26_s29 = sadd.s32 1, %s973_s26  ;;  %s29_s30 = sadd.s32 1, %s977_s27  ;;  %s981_s28 = sphi %s1032_s28, %s17_s28   ;;  %s977_s27 = sphi %s1030_s27, %s1234_s27   ;;  %s973_s26 = sphi %s1028_s26, %s1233_s26   ;;  %s969_s25 = sphi %s1026_s25, %s1232_s25   ;;  %s965_s24 = sphi %s1024_s24, %s1231_s24  }
   0x4   : > { %p27_p0 = scmp.ge.s32.totalorder %s26_s29, 8  ;;  %p865_p1 = scmp.ge.s32.totalorder %s981_s28, 1 }
   0x5   : > { %p297_p2 = scmp.lt.s32.totalorder %s981_s28, 17 }
   0x6   : > { %s1236_s29 = smov (%p27_p0, %s26_s29), 0  ;;  %s1238_s30 = smov (!%p27_p0, %s29_s30), %s977_s27 }
   0x7   : > { %p298_p3 = pnand %p865_p1, %p297_p2  ;;  %p31_p4 = scmp.ge.s32.totalorder %s1238_s30, 2 }
   0x8   : > { %p356_p5 = scmp.lt.s32.totalorder (!%p298_p3), %s969_s25, 1  ;;  %p358_p6 = scmp.lt.s32.totalorder (!%p298_p3), %s965_s24, 9 }
   0x9   : > { %s1240_s30 = smov (%p31_p4, %s1238_s30), 0  ;;  %301 = sbr.rel (%p298_p3) target bundleno = 186 (0xba), region = 48 }
   0xa   : > { %p415_p7 = scmp.ge.s32.totalorder (!%p298_p3), %s965_s24, 1  ;;  %p416_p8 = scmp.le.s32.totalorder (!%p298_p3), %s965_s24, 8 }
   0xb   : > { %s1091_s11 = sadd.s32 (!%p298_p3), 1, %s965_s24  ;;  %s1121_s12 = sadd.s32 (!%p298_p3), 2, %s965_s24 }
   0xc   : > { %p1077_p9 = pnand (!%p298_p3), %p416_p8, %p415_p7  ;;  %p368_p10 = scmp.lt.s32.totalorder (!%p298_p3), %s1091_s11, 9 }
   0xd   : > { %p525_p11 = scmp.ge.s32.totalorder (!%p298_p3), %s1091_s11, 1  ;;  %p526_p12 = scmp.le.s32.totalorder (!%p298_p3), %s1091_s11, 8 }
   0xe   : > { %v880_v0 = vld [vmem:[%s1225_s5 + $0x10] sm:$0xff]  ;;  %v397_v1 = vlaneseq  ;;  %s1242_s25 = smov (!%p356_p5, %s969_s25), 1  ;;  %v439_v4 = vld [vmem:[%s1225_s5] sm:$0xff]  ;;  %v883_v5 = vld [vmem:[%s1225_s5 + $0x18] sm:$0xff]  ;;  %v983_v19 = vmov 0.0   ;;  %p379_p13 = scmp.lt.s32.totalorder %s1121_s12, 9 }
   0xf   : > { %518 = vmatpush.msra.mxu2 %v880_v0  ;;  %s359_s10 = scalar_select %p358_p6, %s965_s24, 9  ;;  %v890_v3 = vld [vmem:[%s1225_s5 + $0x30] sm:$0xff]  ;;  %459 = vmatpush.msra.mxu0 %v439_v4  ;;  %v885_v6 = vld [vmem:[%s1225_s5 + $0x20] sm:$0xff]  ;;  %v892_v7 = vld [vmem:[%s1225_s5 + $0x38] sm:$0xff]  ;;  %vm440_vm2 = vcmask 64512   ;;  %vm497_vm3 = vcmask 1045504  }
  0x10   : > { %v398_v2 = vshrl.u32 %v397_v1, 7  ;;  %s1075_s17 = smul.u32 20, %s1242_s25  ;;  %v878_v8 = vld [vmem:[%s1225_s5 + $0x8] sm:$0xff]  ;;  %563 = vmatpush.msra.mxu3 %v883_v5  ;;  %v1100_v11 = vld [vmem:[%s1223_s3] ss:$0 sm:$0xff]  ;;  %p1135_p0 = pnand %p526_p12, %p525_p11  ;;  %vm468_vm4 = vcmask 1046528  }
  0x11   : > { %665 = vmatpush.msrb.mxu2 %v890_v3  ;;  %s866_s9 = sshll.u32 %s359_s10, 1  ;;  %592 = vmatpush.msrb.mxu0 %v885_v6  ;;  %v887_v9 = vld [vmem:[%s1225_s5 + $0x28] sm:$0xff]  ;;  %v1110_v12 = vld [vmem:[%s1224_s4] ss:$0 sm:$0xff]  ;;  %p627_p1 = scmp.ge.s32.totalorder %s1121_s12, 1 }
  0x12   : > { %s362_s14 = sadd.s32 %s1075_s17, %s866_s9  ;;  %v399_v10 = vadd.s32 8, %v398_v2  ;;  %694 = vmatpush.msrb.mxu3 %v892_v7  ;;  %489 = vmatpush.msra.mxu1 %v878_v8  ;;  %vm400_vm0 = vcmp.ge.s32.totalorder %v398_v2, 1  ;;  %p628_p2 = scmp.le.s32.totalorder %s1121_s12, 8  ;;  %v894_v33 = vld [vmem:[%s1225_s5 + $0x40] sm:$0xff] }
  0x13   : > { %s867_s10 = sshll.u32 %s362_s14, 3  ;;  %v1125_v20 = vsel %vm400_vm0, 1.0, %v983_v19  ;;  %p389_p4 = scmp.lt.s32.totalorder %s965_s24, 7 }
  0x14   : > { %620 = vmatpush.msrb.mxu1 %v887_v9  ;;  %s364_s21 = scalar_lea.vmem %s1220_s0, %s867_s10  ;;  %vm403_vm1 = vcmp.le.s32.totalorder %v399_v10, 8  ;;  %p1164_p3 = pnand %p628_p2, %p627_p1  ;;  %v942_v10 = vld [vmem:[%s1226_s6] ss:$0 sm:$0xff] }
  0x15   : > { %s876_s8 = scalar_select %p1077_p9, 0.0, 1.0  ;;  %v420_v13 = vld [vmem:[%s364_s21] sm:$0xff]  ;;  %v421_v14 = vld [vmem:[%s364_s21 + $0x8] sm:$0x3]  ;;  %v1127_v21 = vsel %vm403_vm1, 1.0, %v983_v19 }
  0x16   : > { %v425_v15 = vmul.f32 %v1100_v11, %v420_v13  ;;  %v426_v16 = vmul.f32 %v1100_v11, %v421_v14  ;;  %s369_s9 = scalar_select %p368_p10, %s1091_s11, 9 }
  0x17   : > { %v436_v24 = vstv %s876_s8  ;;  %s380_s11 = scalar_select %p379_p13, %s1121_s12, 9 }
  0x18   : > { %v430_v17 = vadd.f32 %v1110_v12, %v425_v15  ;;  %v431_v18 = vadd.f32 %v1110_v12, %v426_v16  ;;  %s868_s18 = sshll.u32 %s369_s9, 1  ;;  %s1244_s24 = smov (!%p389_p4, %s965_s24), 7 }
  0x19   : > { %s372_s13 = sadd.s32 %s1075_s17, %s868_s18  ;;  %s870_s23 = sshll.u32 %s380_s11, 1 }
  0x1a   : > { %v432_v22 = vmax.f32 %v430_v17, 0.0  ;;  %v433_v23 = vmax.f32 %v431_v18, 0.0  ;;  %s869_s14 = sshll.u32 %s372_s13, 3  ;;  %s383_s8 = sadd.s32 %s1075_s17, %s870_s23 }
  0x1b   : > { %s374_s19 = scalar_lea.vmem %s1221_s1, %s869_s14  ;;  %s871_s9 = sshll.u32 %s383_s8, 3 }
  0x1c   : > { %v434_v25 = vmul.f32 %v1125_v20, %v432_v22  ;;  %v435_v26 = vmul.f32 %v1127_v21, %v433_v23  ;;  %v530_v27 = vld [vmem:[%s374_s19] sm:$0xff]  ;;  %v531_v28 = vld [vmem:[%s374_s19 + $0x8] sm:$0x3]  ;;  %s882_s20 = scalar_select %p1135_p0, 0.0, 1.0 }
  0x1d   : > { %v532_v29 = vmul.f32 %v1100_v11, %v530_v27  ;;  %v533_v30 = vmul.f32 %v1100_v11, %v531_v28  ;;  %s385_s17 = scalar_lea.vmem %s1222_s2, %s871_s9  ;;  %s872_s10 = sshll.u32 %s1242_s25, 3 }
  0x1e   : > { %v437_v31 = vmul.f32 %v436_v24, %v434_v25  ;;  %v438_v32 = vmul.f32 %v436_v24, %v435_v26  ;;  %v540_v43 = vstv %s882_s20  ;;  %v632_v47 = vld [vmem:[%s385_s17] sm:$0xff]  ;;  %v633_v48 = vld [vmem:[%s385_s17 + $0x8] sm:$0x3]  ;;  %s889_s12 = scalar_select %p1164_p3, 0.0, 1.0 }
  0x1f   : > { %v534_v34 = vadd.f32 %v1110_v12, %v532_v29  ;;  %v535_v35 = vadd.f32 %v1110_v12, %v533_v30  ;;  %v634_v49 = vmul.f32 %v1100_v11, %v632_v47  ;;  %v635_v50 = vmul.f32 %v1100_v11, %v633_v48  ;;  %s392_s19 = sadd.s32 %s872_s10, %s1244_s24 }
  0x20   : > { %v498_v36 = vrot.slane %v437_v31, 2  ;;  %v499_v37 = vrot.slane %v438_v32, 2  ;;  %877 = vmatmul.msk.f32.vlgmr.msra.gmra.mxu0 %vm440_vm2, %v437_v31  ;;  %v469_v38 = vrot.slane %v437_v31, 1  ;;  %v470_v39 = vrot.slane %v438_v32, 1  ;;  %s873_s11 = sshll.u32 %s392_s19, 3 }
  0x21   : > { %v536_v40 = vmax.f32 %v534_v34, 0.0  ;;  %v537_v41 = vmax.f32 %v535_v35, 0.0  ;;  %722 = vmatpush.msra.mxu0 %v894_v33  ;;  %v636_v53 = vadd.f32 %v1110_v12, %v634_v49  ;;  %v637_v54 = vadd.f32 %v1110_v12, %v635_v50  ;;  %s394_s22 = scalar_lea.vmem %s1227_s7, %s873_s11 }
  0x22   : > { %v500_v42 = vsel %vm497_vm3, %v498_v36, %v499_v37  ;;  %v471_v44 = vsel %vm468_vm4, %v469_v38, %v470_v39  ;;  %v642_v61 = vstv %s889_s12 }
  0x23   : > { %881 = vmatmul.msk.f32.vlgmr.msra.gmra.mxu2 %vm440_vm2, %v500_v42  ;;  %v538_v45 = vmul.f32 %v1125_v20, %v536_v40  ;;  %v539_v46 = vmul.f32 %v1127_v21, %v537_v41  ;;  %879 = vmatmul.msk.f32.vlgmr.msra.gmra.mxu1 %vm440_vm2, %v471_v44  ;;  %v638_v59 = vmax.f32 %v636_v53, 0.0  ;;  %v639_v60 = vmax.f32 %v637_v54, 0.0 }
  0x25   : > { %v541_v51 = vmul.f32 %v540_v43, %v538_v45  ;;  %v542_v52 = vmul.f32 %v540_v43, %v539_v46  ;;  %v640_v0 = vmul.f32 %v1125_v20, %v638_v59  ;;  %v641_v1 = vmul.f32 %v1127_v21, %v639_v60 }
  0x27   : > { %884 = vmatmul.msk.f32.vlgmr.msra.gmra.mxu3 %vm440_vm2, %v541_v51  ;;  %v572_v55 = vrot.slane %v541_v51, 1  ;;  %v573_v56 = vrot.slane %v542_v52, 1  ;;  %v600_v57 = vrot.slane %v541_v51, 2  ;;  %v601_v58 = vrot.slane %v542_v52, 2 }
  0x28   : > { %v643_v2 = vmul.f32 %v642_v61, %v640_v0  ;;  %v644_v3 = vmul.f32 %v642_v61, %v641_v1 }
  0x29   : > { %v574_v62 = vsel %vm468_vm4, %v572_v55, %v573_v56  ;;  %v602_v63 = vsel %vm497_vm3, %v600_v57, %v601_v58 }
  0x2a   : > { %886 = vmatmul.msk.f32.vlgmr.msrb.gmra.mxu0 %vm440_vm2, %v574_v62  ;;  %v674_v4 = vrot.slane %v643_v2, 1  ;;  %v675_v5 = vrot.slane %v644_v3, 1  ;;  %v702_v6 = vrot.slane %v643_v2, 2  ;;  %v703_v7 = vrot.slane %v644_v3, 2 }
  0x2b   : > { %888 = vmatmul.msk.f32.vlgmr.msrb.gmra.mxu1 %vm440_vm2, %v602_v63  ;;  %891 = vmatmul.msk.f32.vlgmr.msrb.gmra.mxu2 %vm440_vm2, %v643_v2 }
  0x2c   : > { %v676_v8 = vsel %vm468_vm4, %v674_v4, %v675_v5  ;;  %v704_v9 = vsel %vm497_vm3, %v702_v6, %v703_v7 }
  0x2f   : > { %893 = vmatmul.msk.f32.vlgmr.msrb.gmra.mxu3 %vm440_vm2, %v676_v8 }
  0x32   : > { %895 = vmatmul.msk.f32.vlgmr.msra.gmra.mxu0 %vm440_vm2, %v704_v9 }
  0x9d   : > { %v461_v11 = vpop.f32.mrf.mxu0 }
  0x9e   : > { %v464_v12 = vadd.f32 %v942_v10, %v461_v11 }
  0xa0   : > { %v491_v13 = vpop.f32.mrf.mxu1 }
  0xa1   : > { %v494_v14 = vadd.f32 %v491_v13, %v464_v12 }
  0xa6   : > { %v520_v15 = vpop.f32.mrf.mxu2 }
  0xa7   : > { %v523_v16 = vadd.f32 %v520_v15, %v494_v14  ;;  %v594_v18 = vpop.f32.mrf.mxu0 }
  0xa8   : > { %v622_v20 = vpop.f32.mrf.mxu1 }
  0xaa   : > { %v565_v17 = vpop.f32.mrf.mxu3 }
  0xab   : > { %v568_v19 = vadd.f32 %v565_v17, %v523_v16 }
  0xad   : > { %v597_v21 = vadd.f32 %v594_v18, %v568_v19 }
  0xae   : > { %v667_v23 = vpop.f32.mrf.mxu2 }
  0xaf   : > { %v625_v22 = vadd.f32 %v622_v20, %v597_v21  ;;  %v724_v26 = vpop.f32.mrf.mxu0 }
  0xb1   : > { %v670_v24 = vadd.f32 %v667_v23, %v625_v22 }
  0xb2   : > { %v696_v25 = vpop.f32.mrf.mxu3 }
  0xb3   : > { %v699_v27 = vadd.f32 %v696_v25, %v670_v24 }
  0xb5   : > { %v727_v28 = vadd.f32 %v724_v26, %v699_v27 }
  0xb7   : > { %v728_v29 = vmax.f32 %v727_v28, 0.0 }
  0xb9   : > { %729 = vst.msk [vmem:[%s394_s22] sm:$0xff] %vm440_vm2, %v728_v29 }
  0xba PF: > { %s17_s28 = sadd.s32 1, %s981_s28   ;;  %s1231_s24 = smov %s973_s26 }
  0xbb   : > { %p14_p5 = scmp.ge.s32.totalorder %s17_s28, 18   ;;  %s1232_s25 = smov %s977_s27 }
  0xbc   : > { %s1233_s26 = smov %s1236_s29  ;;  %s1234_s27 = smov %s1240_s30 }
  0xbd   :  { %16 = sbr.rel (!%p14_p5) target bundleno = 3 (0x3), region = 92 }

</bundles_post_ra>
